<compile_context>
chip_gen: v7x
topology: tpu7x:2x2x1
jax: 0.10.0
libtpu: 0.0.40
codegen_flags: <defaults>
</compile_context>

<pallas_src>
import jax
import jax.numpy as jnp
from jax.experimental import pallas as pl
from jax.experimental.pallas import tpu as pltpu


def _round_up(n, m):
    return ((n + m - 1) // m) * m


def simplenet_kernel(x_ref,
                     w1_ref, b1_ref,
                     w2_ref, b2_ref,
                     w3_ref, b3_ref,
                     wh_ref, bh_ref,
                     out_ref):
    x = x_ref[...]                                    # [D, TB]

    # Hoist bias reads once (straight-line body).
    b1 = b1_ref[...]                                  # [64, 1]
    b2 = b2_ref[...]                                  # [64, 1]
    b3 = b3_ref[...]                                  # [32, 1]
    bh = bh_ref[...]                                  # [2, 1]

    # fc1 + relu.
    if x.shape[0] == 1:
        # K=1 contraction is an outer product: [64,1] * [1,TB] on the VPU.
        # w1's lane-broadcast is a one-off tiny op; x broadcasts along the
        # cheap sublane direction.
        h1 = w1_ref[...] * x + b1
    else:
        h1 = jnp.dot(w1_ref[...], x, preferred_element_type=jnp.float32) + b1
    h1 = jnp.maximum(h1, 0.0)                         # [64, TB]

    # fc2 + relu : [64,64] @ [64,TB]
    h2 = jnp.dot(w2_ref[...], h1, preferred_element_type=jnp.float32) + b2
    h2 = jnp.maximum(h2, 0.0)                         # [64, TB]

    # fc3 + relu : [32,64] @ [64,TB]
    h3 = jnp.dot(w3_ref[...], h2, preferred_element_type=jnp.float32) + b3
    h3 = jnp.maximum(h3, 0.0)                         # [32, TB]

    # Fused heads : [2,32] @ [32,TB]; row 0 = mu, row 1 = sd_linear.
    y = jnp.dot(wh_ref[...], h3, preferred_element_type=jnp.float32) + bh

    # Row-wise epilogue: exp (EUP) only on the sd row; both stores lane-dense.
    out_ref[0:1, :] = y[0:1, :]
    out_ref[1:2, :] = jnp.exp(-0.5 * y[1:2, :])


def simplenet_forward(x, params, tile_b=4096):
    """x: [B, input_dim] float32 -> (mu [B,1], sd [B,1])."""
    B, D = x.shape

    # Batch lives in the lane dimension -> the batch tile must be a multiple
    # of 128 (or the full, padded batch).
    b_pad = _round_up(B, 128)
    tb = min(_round_up(tile_b, 128), b_pad)
    # Prefer >= 2 grid steps for non-tiny batches so the "parallel" batch axis
    # can actually shard across both TensorCores on v7x megacore.
    if b_pad > 128 and b_pad // tb < 2:
        tb = _round_up(pl.cdiv(b_pad, 2), 128)
    Bp = _round_up(b_pad, tb)
    n_tiles = Bp // tb

    # Feature-major input: [D, Bp] (free reshape for D == 1), zero-padded batch.
    xt = jnp.pad(x.T, ((0, 0), (0, Bp - B)))

    def resident(shape):
        # Full-array block, same block every grid step (stays VMEM-resident).
        return pl.BlockSpec(shape, lambda i: (0, 0))

    in_specs = [
        pl.BlockSpec((D, tb), lambda i: (0, i)),      # x: tiled along batch/lanes
        resident(params["w1"].shape), resident(params["b1"].shape),
        resident(params["w2"].shape), resident(params["b2"].shape),
        resident(params["w3"].shape), resident(params["b3"].shape),
        resident(params["wh"].shape), resident(params["bh"].shape),
    ]
    out_specs = pl.BlockSpec((2, tb), lambda i: (0, i))
    out_shape = jax.ShapeDtypeStruct((2, Bp), jnp.float32)

    flops = 2 * B * (D * 64 + 64 * 64 + 64 * 32 + 32 * 2)
    bytes_accessed = (4 * (B * D + 2 * B)
                      + 4 * (64 * D + 64 * 64 + 64 * 32 + 32 * 2
                             + 64 + 64 + 32 + 2))

    y = pl.pallas_call(
        simplenet_kernel,
        grid=(n_tiles,),
        in_specs=in_specs,
        out_specs=out_specs,
        out_shape=out_shape,
        compiler_params=pltpu.CompilerParams(
            dimension_semantics=("parallel",)),       # megacore when n_tiles >= 2
        cost_estimate=pl.CostEstimate(
            flops=flops, transcendentals=B, bytes_accessed=bytes_accessed),
    )(xt,
      params["w1"], params["b1"],
      params["w2"], params["b2"],
      params["w3"], params["b3"],
      params["wh"], params["bh"])

    mu = y[0:1, :B].T                                 # [B, 1]
    sd = y[1:2, :B].T                                 # [B, 1]
    return mu, sd


def init_params(key, input_dim=1):
    """PyTorch nn.Linear-style init (uniform +-1/sqrt(fan_in)).
    Weights stored feature-major [out, in] (PyTorch-native); biases [out, 1].
    The two heads are fused into one [2, 32] weight / [2, 1] bias
    (row 0 = mu, row 1 = sd)."""
    def linear(key, fan_in, fan_out):
        kw, kb = jax.random.split(key)
        bound = 1.0 / jnp.sqrt(fan_in)
        w = jax.random.uniform(kw, (fan_out, fan_in), jnp.float32, -bound, bound)
        b = jax.random.uniform(kb, (fan_out, 1), jnp.float32, -bound, bound)
        return w, b

    keys = jax.random.split(key, 5)
    w1, b1 = linear(keys[0], input_dim, 64)
    w2, b2 = linear(keys[1], 64, 64)
    w3, b3 = linear(keys[2], 64, 32)
    wmu, bmu = linear(keys[3], 32, 1)
    wsd, bsd = linear(keys[4], 32, 1)
    wh = jnp.concatenate([wmu, wsd], axis=0)          # [2, 32]
    bh = jnp.concatenate([bmu, bsd], axis=0)          # [2, 1]
    return dict(w1=w1, b1=b1, w2=w2, b2=b2, w3=w3, b3=b3, wh=wh, bh=bh)


def reference_forward(x, p):
    h1 = jnp.maximum(x @ p["w1"].T + p["b1"].T, 0.0)
    h2 = jnp.maximum(h1 @ p["w2"].T + p["b2"].T, 0.0)
    h3 = jnp.maximum(h2 @ p["w3"].T + p["b3"].T, 0.0)
    head = h3 @ p["wh"].T + p["bh"].T                 # [B, 2]
    mu = head[:, 0:1]
    sd = jnp.exp(-0.5 * head[:, 1:2])
    return mu, sd


if __name__ == "__main__":
    input_dim = 1
    key = jax.random.PRNGKey(0)
    kx, kp = jax.random.split(key)
    params = init_params(kp, input_dim)

    ok = True
    # 8: single tile; 13: padding/slicing path; 300: multi-tile (2-core) path.
    for batch in (8, 13, 300):
        x = jax.random.normal(jax.random.fold_in(kx, batch),
                              (batch, input_dim), jnp.float32)
        mu, sd = simplenet_forward(x, params)
        mu = jax.block_until_ready(mu)
        sd = jax.block_until_ready(sd)
        mu_ref, sd_ref = reference_forward(x, params)
        ok &= bool(jnp.allclose(mu, mu_ref, atol=1e-5, rtol=1e-5))
        ok &= bool(jnp.allclose(sd, sd_ref, atol=1e-5, rtol=1e-5))

    assert ok, "mismatch vs reference"
    print("KERNEL_OK")
</pallas_src>

<mosaic_0001>
module attributes {stable_mosaic.version = 11 : i64} {
  func.func @simplenet_kernel(%arg0: i32, %arg1: memref<1x128xf32, #tpu.memory_space<vmem>>, %arg2: memref<64x1xf32, #tpu.memory_space<vmem>>, %arg3: memref<64x1xf32, #tpu.memory_space<vmem>>, %arg4: memref<64x64xf32, #tpu.memory_space<vmem>>, %arg5: memref<64x1xf32, #tpu.memory_space<vmem>>, %arg6: memref<32x64xf32, #tpu.memory_space<vmem>>, %arg7: memref<32x1xf32, #tpu.memory_space<vmem>>, %arg8: memref<2x32xf32, #tpu.memory_space<vmem>>, %arg9: memref<2x1xf32, #tpu.memory_space<vmem>>, %arg10: memref<2x128xf32, #tpu.memory_space<vmem>>) attributes {dimension_semantics = [#tpu.dimension_semantics<parallel>], iteration_bounds = array<i64: 1>, scalar_prefetch = 0 : i64, scratch_operands = 0 : i64, tpu.core_type = #tpu.core_type<tc>, window_params = [{transform_indices = @transform_0, window_bounds = array<i64: 1, 128>}, {pipeline_mode = #tpu.pipeline_mode<synchronous>, transform_indices = @transform_1, window_bounds = array<i64: 64, 1>}, {pipeline_mode = #tpu.pipeline_mode<synchronous>, transform_indices = @transform_2, window_bounds = array<i64: 64, 1>}, {pipeline_mode = #tpu.pipeline_mode<synchronous>, transform_indices = @transform_3, window_bounds = array<i64: 64, 64>}, {pipeline_mode = #tpu.pipeline_mode<synchronous>, transform_indices = @transform_4, window_bounds = array<i64: 64, 1>}, {pipeline_mode = #tpu.pipeline_mode<synchronous>, transform_indices = @transform_5, window_bounds = array<i64: 32, 64>}, {pipeline_mode = #tpu.pipeline_mode<synchronous>, transform_indices = @transform_6, window_bounds = array<i64: 32, 1>}, {pipeline_mode = #tpu.pipeline_mode<synchronous>, transform_indices = @transform_7, window_bounds = array<i64: 2, 32>}, {pipeline_mode = #tpu.pipeline_mode<synchronous>, transform_indices = @transform_8, window_bounds = array<i64: 2, 1>}, {transform_indices = @transform_9, window_bounds = array<i64: 2, 128>}]} {
    %c0 = arith.constant 0 : index
    %c0_0 = arith.constant 0 : index
    %0 = vector.load %arg1[%c0, %c0_0] : memref<1x128xf32, #tpu.memory_space<vmem>>, vector<1x128xf32>
    %c0_1 = arith.constant 0 : index
    %c0_2 = arith.constant 0 : index
    %1 = vector.load %arg3[%c0_1, %c0_2] : memref<64x1xf32, #tpu.memory_space<vmem>>, vector<64x1xf32>
    %c0_3 = arith.constant 0 : index
    %c0_4 = arith.constant 0 : index
    %2 = vector.load %arg5[%c0_3, %c0_4] : memref<64x1xf32, #tpu.memory_space<vmem>>, vector<64x1xf32>
    %c0_5 = arith.constant 0 : index
    %c0_6 = arith.constant 0 : index
    %3 = vector.load %arg7[%c0_5, %c0_6] : memref<32x1xf32, #tpu.memory_space<vmem>>, vector<32x1xf32>
    %c0_7 = arith.constant 0 : index
    %c0_8 = arith.constant 0 : index
    %4 = vector.load %arg9[%c0_7, %c0_8] : memref<2x1xf32, #tpu.memory_space<vmem>>, vector<2x1xf32>
    %c0_9 = arith.constant 0 : index
    %c0_10 = arith.constant 0 : index
    %5 = vector.load %arg2[%c0_9, %c0_10] : memref<64x1xf32, #tpu.memory_space<vmem>>, vector<64x1xf32>
    %6 = vector.broadcast %5 : vector<64x1xf32> to vector<64x128xf32>
    %7 = vector.broadcast %0 : vector<1x128xf32> to vector<64x128xf32>
    %8 = arith.mulf %6, %7 : vector<64x128xf32>
    %9 = vector.broadcast %1 : vector<64x1xf32> to vector<64x128xf32>
    %10 = arith.addf %8, %9 : vector<64x128xf32>
    %cst = arith.constant 0.000000e+00 : f32
    %11 = vector.broadcast %cst : f32 to vector<64x128xf32>
    %12 = arith.maximumf %10, %11 : vector<64x128xf32>
    %c0_11 = arith.constant 0 : index
    %c0_12 = arith.constant 0 : index
    %13 = vector.load %arg4[%c0_11, %c0_12] : memref<64x64xf32, #tpu.memory_space<vmem>>, vector<64x64xf32>
    %cst_13 = arith.constant dense<0.000000e+00> : vector<64x128xf32>
    %14 = tpu.matmul %13, %12, %cst_13 {dimension_numbers = #tpu.dot_dimension_numbers<[1], [0], [0], [1], [0, 0, 1, 1], [], []>} : vector<64x64xf32>, vector<64x128xf32>, vector<64x128xf32> -> vector<64x128xf32>
    %15 = vector.broadcast %2 : vector<64x1xf32> to vector<64x128xf32>
    %16 = arith.addf %14, %15 : vector<64x128xf32>
    %cst_14 = arith.constant 0.000000e+00 : f32
    %17 = vector.broadcast %cst_14 : f32 to vector<64x128xf32>
    %18 = arith.maximumf %16, %17 : vector<64x128xf32>
    %c0_15 = arith.constant 0 : index
    %c0_16 = arith.constant 0 : index
    %19 = vector.load %arg6[%c0_15, %c0_16] : memref<32x64xf32, #tpu.memory_space<vmem>>, vector<32x64xf32>
    %cst_17 = arith.constant dense<0.000000e+00> : vector<32x128xf32>
    %20 = tpu.matmul %19, %18, %cst_17 {dimension_numbers = #tpu.dot_dimension_numbers<[1], [0], [0], [1], [0, 0, 1, 1], [], []>} : vector<32x64xf32>, vector<64x128xf32>, vector<32x128xf32> -> vector<32x128xf32>
    %21 = vector.broadcast %3 : vector<32x1xf32> to vector<32x128xf32>
    %22 = arith.addf %20, %21 : vector<32x128xf32>
    %cst_18 = arith.constant 0.000000e+00 : f32
    %23 = vector.broadcast %cst_18 : f32 to vector<32x128xf32>
    %24 = arith.maximumf %22, %23 : vector<32x128xf32>
    %c0_19 = arith.constant 0 : index
    %c0_20 = arith.constant 0 : index
    %25 = vector.load %arg8[%c0_19, %c0_20] : memref<2x32xf32, #tpu.memory_space<vmem>>, vector<2x32xf32>
    %cst_21 = arith.constant dense<0.000000e+00> : vector<2x128xf32>
    %26 = tpu.matmul %25, %24, %cst_21 {dimension_numbers = #tpu.dot_dimension_numbers<[1], [0], [0], [1], [0, 0, 1, 1], [], []>} : vector<2x32xf32>, vector<32x128xf32>, vector<2x128xf32> -> vector<2x128xf32>
    %27 = vector.broadcast %4 : vector<2x1xf32> to vector<2x128xf32>
    %28 = arith.addf %26, %27 : vector<2x128xf32>
    %29 = vector.extract_strided_slice %28 {offsets = [0, 0], sizes = [1, 128], strides = [1, 1]} : vector<2x128xf32> to vector<1x128xf32>
    %c0_22 = arith.constant 0 : index
    %c0_23 = arith.constant 0 : index
    %30 = vector.load %arg10[%c0_22, %c0_23] : memref<2x128xf32, #tpu.memory_space<vmem>>, vector<1x128xf32>
    tpu.vector_store %arg10[%c0_22, %c0_23], %29 {strides = array<i32>} : memref<2x128xf32, #tpu.memory_space<vmem>>, vector<1x128xf32>,
    %31 = vector.extract_strided_slice %28 {offsets = [1, 0], sizes = [1, 128], strides = [1, 1]} : vector<2x128xf32> to vector<1x128xf32>
    %cst_24 = arith.constant -5.000000e-01 : f32
    %32 = vector.broadcast %cst_24 : f32 to vector<1x128xf32>
    %33 = arith.mulf %32, %31 : vector<1x128xf32>
    %34 = math.exp %33 : vector<1x128xf32>
    %c1 = arith.constant 1 : index
    %c0_25 = arith.constant 0 : index
    %35 = vector.load %arg10[%c1, %c0_25] : memref<2x128xf32, #tpu.memory_space<vmem>>, vector<1x128xf32>
    tpu.vector_store %arg10[%c1, %c0_25], %34 {strides = array<i32>} : memref<2x128xf32, #tpu.memory_space<vmem>>, vector<1x128xf32>,
    return
  }
  func.func @transform_0(%arg0: i32) -> (i32, i32) {
    %c0_i32 = arith.constant 0 : i32
    %c0_i32_0 = arith.constant 0 : i32
    return %c0_i32, %arg0 : i32, i32
  }
  func.func @transform_1(%arg0: i32) -> (i32, i32) {
    %c0_i32 = arith.constant 0 : i32
    %c0_i32_0 = arith.constant 0 : i32
    %c0_i32_1 = arith.constant 0 : i32
    return %c0_i32, %c0_i32_0 : i32, i32
  }
  func.func @transform_2(%arg0: i32) -> (i32, i32) {
    %c0_i32 = arith.constant 0 : i32
    %c0_i32_0 = arith.constant 0 : i32
    %c0_i32_1 = arith.constant 0 : i32
    return %c0_i32, %c0_i32_0 : i32, i32
  }
  func.func @transform_3(%arg0: i32) -> (i32, i32) {
    %c0_i32 = arith.constant 0 : i32
    %c0_i32_0 = arith.constant 0 : i32
    %c0_i32_1 = arith.constant 0 : i32
    return %c0_i32, %c0_i32_0 : i32, i32
  }
  func.func @transform_4(%arg0: i32) -> (i32, i32) {
    %c0_i32 = arith.constant 0 : i32
    %c0_i32_0 = arith.constant 0 : i32
    %c0_i32_1 = arith.constant 0 : i32
    return %c0_i32, %c0_i32_0 : i32, i32
  }
  func.func @transform_5(%arg0: i32) -> (i32, i32) {
    %c0_i32 = arith.constant 0 : i32
    %c0_i32_0 = arith.constant 0 : i32
    %c0_i32_1 = arith.constant 0 : i32
    return %c0_i32, %c0_i32_0 : i32, i32
  }
  func.func @transform_6(%arg0: i32) -> (i32, i32) {
    %c0_i32 = arith.constant 0 : i32
    %c0_i32_0 = arith.constant 0 : i32
    %c0_i32_1 = arith.constant 0 : i32
    return %c0_i32, %c0_i32_0 : i32, i32
  }
  func.func @transform_7(%arg0: i32) -> (i32, i32) {
    %c0_i32 = arith.constant 0 : i32
    %c0_i32_0 = arith.constant 0 : i32
    %c0_i32_1 = arith.constant 0 : i32
    return %c0_i32, %c0_i32_0 : i32, i32
  }
  func.func @transform_8(%arg0: i32) -> (i32, i32) {
    %c0_i32 = arith.constant 0 : i32
    %c0_i32_0 = arith.constant 0 : i32
    %c0_i32_1 = arith.constant 0 : i32
    return %c0_i32, %c0_i32_0 : i32, i32
  }
  func.func @transform_9(%arg0: i32) -> (i32, i32) {
    %c0_i32 = arith.constant 0 : i32
    %c0_i32_0 = arith.constant 0 : i32
    return %c0_i32, %arg0 : i32, i32
  }
}

</mosaic_0001>

<bundles_post_ra>
// kernel: tpu_custom_call.1
= control target key start
LH: loop header
LB: loop body
LE: loop exit
PB: predicated region body
PF: predicated region fallthrough
CT: control target
= control target key end

     0   :  { %v762_v2 = vmov 0   ;;  %s970_s0 = inlined_call_operand.vmem [shape: f32[1,128], index: 0, kind: input, shape index: {}]   ;;  %s971_s1 = inlined_call_operand.vmem [shape: f32[64,1], index: 1, kind: input, shape index: {}]   ;;  %s972_s2 = inlined_call_operand.vmem [shape: f32[64,1], index: 2, kind: input, shape index: {}]   ;;  %s973_s3 = inlined_call_operand.vmem [shape: f32[64,64], index: 3, kind: input, shape index: {}]   ;;  %s974_s4 = inlined_call_operand.vmem [shape: f32[64,1], index: 4, kind: input, shape index: {}]   ;;  %s975_s5 = inlined_call_operand.vmem [shape: f32[32,64], index: 5, kind: input, shape index: {}]   ;;  %s976_s6 = inlined_call_operand.vmem [shape: f32[32,1], index: 6, kind: input, shape index: {}]   ;;  %s977_s7 = inlined_call_operand.vmem [shape: f32[2,32], index: 7, kind: input, shape index: {}]   ;;  %s978_s8 = inlined_call_operand.vmem [shape: f32[2,1], index: 8, kind: input, shape index: {}]   ;;  %s979_s9 = inlined_call_operand.hbm [shape: f32[2,128], index: 9, kind: output, shape index: {}]  }
   0x1   :  { %v55_v0 = vld [vmem:[%s971_s1] sm:$0xff]  ;;  %735 = vset.pattern.permute.xlu1 %v762_v2  ;;  %734 = vset.pattern.permute.xlu0 %v762_v2  ;;  %v56_v3 = vld [vmem:[%s971_s1 + $0x8] sm:$0xff]  ;;  %v57_v5 = vld [vmem:[%s971_s1 + $0x10] sm:$0xff] }
   0x2   :  { %v34_v1 = vld [vmem:[%s972_s2] sm:$0xff]  ;;  %65 = vperm.xlu0 %734, %v55_v0   ;;  %v35_v4 = vld [vmem:[%s972_s2 + $0x8] sm:$0xff]  ;;  %v58_v6 = vld [vmem:[%s971_s1 + $0x18] sm:$0xff] }
   0x3   :  { %119 = vperm.xlu1 %735, %v34_v1  }
   0x6   :  { %70 = vperm.xlu0 %734, %v56_v3  }
   0x7   :  { %124 = vperm.xlu1 %735, %v35_v4  }
   0xa   :  { %75 = vperm.xlu0 %734, %v57_v5  }
   0xb   :  { %80 = vperm.xlu1 %735, %v58_v6  }
   0xc   :  { %14 = vsyncpa [#allocation3], 0  ;;  %v36_v7 = vld [vmem:[%s972_s2 + $0x10] sm:$0xff]  ;;  %v37_v8 = vld [vmem:[%s972_s2 + $0x18] sm:$0xff]  ;;  %vm221_vm0 = vcmask 523264   ;;  %vm764_vm1 = vmmov 0  }
   0xd   :  { %v59_v9 = vld [vmem:[%s971_s1 + $0x20] sm:$0xff]  ;;  %v60_v10 = vld [vmem:[%s971_s1 + $0x28] sm:$0xff]  ;;  %v61_v13 = vld [vmem:[%s971_s1 + $0x30] sm:$0xff]  ;;  %vm490_vm2 = vcmask 261120   ;;  %s766_s22 = smov [#allocation2]  }
   0xe   :  { %129 = vperm.xlu0 %734, %v36_v7   ;;  %v38_v11 = vld [vmem:[%s972_s2 + $0x20] sm:$0xff]  ;;  %v39_v12 = vld [vmem:[%s972_s2 + $0x28] sm:$0xff]  ;;  %v62_v14 = vld [vmem:[%s971_s1 + $0x38] sm:$0xff] }
   0xf   :  { %134 = vperm.xlu1 %735, %v37_v8   ;;  %v40_v15 = vld [vmem:[%s972_s2 + $0x30] sm:$0xff]  ;;  %v41_v16 = vld [vmem:[%s972_s2 + $0x38] sm:$0xff]  ;;  %v42_v17 = vld [vmem:[%s974_s4] sm:$0xff] }
  0x10   :  { %v43_v18 = vld [vmem:[%s974_s4 + $0x8] sm:$0xff]  ;;  %v44_v19 = vld [vmem:[%s974_s4 + $0x10] sm:$0xff]  ;;  %v45_v20 = vld [vmem:[%s974_s4 + $0x18] sm:$0xff] }
  0x11   :  { %v173_v21 = vld [vmem:[%s973_s3] sm:$0xff]  ;;  %v47_v23 = vld [vmem:[%s974_s4 + $0x28] sm:$0xff]  ;;  %v48_v24 = vld [vmem:[%s974_s4 + $0x30] sm:$0xff] }
  0x12   :  { %85 = vperm.xlu0 %734, %v59_v9   ;;  %v46_v22 = vld [vmem:[%s974_s4 + $0x20] sm:$0xff]  ;;  %646 = vmatprep.mubr.msk.f32.mxu0 %vm221_vm0, %v173_v21  ;;  %v49_v25 = vld [vmem:[%s974_s4 + $0x38] sm:$0xff]  ;;  %v51_v27 = vld [vmem:[%s976_s6 + $0x8] sm:$0xff]  ;;  %s575_s4 = sshll.u32 %s766_s22, 4  ;;  %s576_s4 = int_to_ptr.vmem [resolvable:$true] %s575_s4 }
  0x13   :  { %90 = vperm.xlu1 %735, %v60_v10   ;;  %v50_v26 = vld [vmem:[%s976_s6] sm:$0xff]  ;;  %v52_v28 = vld [vmem:[%s976_s6 + $0x10] sm:$0xff]  ;;  %v53_v29 = vld [vmem:[%s976_s6 + $0x18] sm:$0xff]  ;;  %s738_s23 = scalar_lea.vmem %s576_s4, 32  ;;  %p743_p1 = scmp.lt.s32.totalorder %s576_s4, %s576_s4 }
  0x14   :  { %v54_v30 = vld [vmem:[%s978_s8] sm:$0x3]  ;;  %p739_p0 = scmp.ne.s32.totalorder %s576_s4, %s738_s23  ;;  %p744_p2 = scmp.lt.s32.totalorder %s738_s23, %s738_s23 }
  0x15   :  { %v583_v31 = vld [vmem:[%s970_s0] ss:$0 sm:$0xff] }
  0x16   :  { %139 = vperm.xlu0 %734, %v38_v11   ;;  %p745_p3 = por %p744_p2, %p743_p1 }
  0x17   :  { %144 = vperm.xlu1 %735, %v39_v12   ;;  %v174_v12 = vld [vmem:[%s973_s3 + $0x8] sm:$0xff] }
  0x18   :  { %p746_p4 = pnand %p745_p3, %p739_p0 }
  0x1a   :  { %95 = vperm.xlu0 %734, %v61_v13   ;;  %v175_v13 = vld [vmem:[%s973_s3 + $0x10] sm:$0xff] }
  0x1b   :  { %100 = vperm.xlu1 %735, %v62_v14   ;;  %v176_v14 = vld [vmem:[%s973_s3 + $0x18] sm:$0xff] }
  0x1e   :  { %149 = vperm.xlu0 %734, %v40_v15   ;;  %v177_v15 = vld [vmem:[%s973_s3 + $0x20] sm:$0xff] }
  0x1f   :  { %154 = vperm.xlu1 %735, %v41_v16   ;;  %v178_v16 = vld [vmem:[%s973_s3 + $0x28] sm:$0xff] }
  0x22   :  { %183 = vperm.xlu0 %734, %v42_v17   ;;  %v179_v17 = vld [vmem:[%s973_s3 + $0x30] sm:$0xff] }
  0x23   :  { %188 = vperm.xlu1 %735, %v43_v18   ;;  %v180_v18 = vld [vmem:[%s973_s3 + $0x38] sm:$0xff] }
  0x26   :  { %193 = vperm.xlu0 %734, %v44_v19   ;;  %v359_v19 = vld [vmem:[%s975_s5] sm:$0xff] }
  0x27   :  { %198 = vperm.xlu1 %735, %v45_v20   ;;  %674 = vmatprep.mubr.msk.f32.mxu1 %vm221_vm0, %v359_v19 }
  0x2a   :  { %203 = vperm.xlu0 %734, %v46_v22  }
  0x2b   :  { %208 = vperm.xlu1 %735, %v47_v23  }
  0x2e   :  { %213 = vperm.xlu0 %734, %v48_v24  }
  0x2f   :  { %218 = vperm.xlu1 %735, %v49_v25  }
  0x32   :  { %365 = vperm.xlu0 %734, %v50_v26  }
  0x33   :  { %370 = vperm.xlu1 %735, %v51_v27  }
  0x36   :  { %375 = vperm.xlu0 %734, %v52_v28  }
  0x37   :  { %380 = vperm.xlu1 %735, %v53_v29  }
  0x3a   :  { %487 = vperm.xlu0 %734, %v54_v30  }
  0x81   :  { %v66_v32 = vpop.permute.xlu0 %65 }
  0x82   :  { %v120_v33 = vpop.permute.xlu1 %119  ;;  %v109_v34 = vmul.f32 %v583_v31, %v66_v32 }
  0x84   :  { %v157_v37 = vadd.f32 %v120_v33, %v109_v34 }
  0x85   :  { %v71_v35 = vpop.permute.xlu0 %70 }
  0x86   :  { %v125_v36 = vpop.permute.xlu1 %124  ;;  %v110_v38 = vmul.f32 %v583_v31, %v71_v35  ;;  %v165_v42 = vmax.f32 %v157_v37, 0.0 }
  0x88   :  { %v158_v39 = vadd.f32 %v125_v36, %v110_v38 }
  0x89   :  { %v76_v40 = vpop.permute.xlu0 %75 }
  0x8a   :  { %v81_v41 = vpop.permute.xlu1 %80  ;;  %v166_v43 = vmax.f32 %v158_v39, 0.0  ;;  %v111_v44 = vmul.f32 %v583_v31, %v76_v40 }
  0x8b   :  { %v112_v45 = vmul.f32 %v583_v31, %v81_v41 }
  0x8c   :  { %v691_v46 = vpack.c.bf16 %v166_v43, %v165_v42 }
  0x8d   :  { %v130_v47 = vpop.permute.xlu0 %129 }
  0x8e   :  { %v135_v48 = vpop.permute.xlu1 %134  ;;  %v159_v49 = vadd.f32 %v130_v47, %v111_v44  ;;  %692 = vmatprep.subr.bf16.mxu0 %v691_v46 }
  0x8f   :  { %v160_v50 = vadd.f32 %v135_v48, %v112_v45  ;;  %694 = vmatpush3.bf16.msra.mxu0 %v691_v46 }
  0x90   :  { %v167_v51 = vmax.f32 %v159_v49, 0.0 }
  0x91   :  { %v168_v52 = vmax.f32 %v160_v50, 0.0  ;;  %v86_v53 = vpop.permute.xlu0 %85 }
  0x92   :  { %v91_v54 = vpop.permute.xlu1 %90  ;;  %v113_v56 = vmul.f32 %v583_v31, %v86_v53 }
  0x93   :  { %v695_v55 = vpack.c.bf16 %v168_v52, %v167_v51  ;;  %v114_v57 = vmul.f32 %v583_v31, %v91_v54 }
  0x95   :  { %696 = vmatprep.subr.bf16.mxu0 %v695_v55  ;;  %v140_v58 = vpop.permute.xlu0 %139 }
  0x96   :  { %v145_v59 = vpop.permute.xlu1 %144  ;;  %698 = vmatpush3.bf16.msra.mxu0 %v695_v55  ;;  %v161_v60 = vadd.f32 %v140_v58, %v113_v56  ;;  %v360_v56 = vld [vmem:[%s975_s5 + $0x8] sm:$0xff]  ;;  %v362_v58 = vld [vmem:[%s975_s5 + $0x18] sm:$0xff] }
  0x97   :  { %v162_v61 = vadd.f32 %v145_v59, %v114_v57  ;;  %v361_v57 = vld [vmem:[%s975_s5 + $0x10] sm:$0xff]  ;;  %v763_v59 = vmov 0.0|0.0  }
  0x98   :  { %v169_v62 = vmax.f32 %v161_v60, 0.0  ;;  %v765_v60 = vmov 0.0  }
  0x99   :  { %v170_v63 = vmax.f32 %v162_v61, 0.0  ;;  %v96_v0 = vpop.permute.xlu0 %95 }
  0x9a   :  { %v101_v1 = vpop.permute.xlu1 %100  ;;  %v115_v3 = vmul.f32 %v583_v31, %v96_v0 }
  0x9b   :  { %v699_v2 = vpack.c.bf16 %v170_v63, %v169_v62  ;;  %v116_v4 = vmul.f32 %v583_v31, %v101_v1 }
  0x9d   :  { %700 = vmatprep.subr.bf16.mxu0 %v699_v2  ;;  %v150_v5 = vpop.permute.xlu0 %149 }
  0x9e   :  { %v155_v6 = vpop.permute.xlu1 %154  ;;  %702 = vmatpush3.bf16.msra.mxu0 %v699_v2  ;;  %v163_v7 = vadd.f32 %v150_v5, %v115_v3 }
  0x9f   :  { %v164_v8 = vadd.f32 %v155_v6, %v116_v4 }
  0xa0   :  { %v171_v9 = vmax.f32 %v163_v7, 0.0 }
  0xa1   :  { %v172_v10 = vmax.f32 %v164_v8, 0.0  ;;  %v184_v21 = vpop.permute.xlu0 %183 }
  0xa2   :  { %v189_v20 = vpop.permute.xlu1 %188 }
  0xa3   :  { %v703_v11 = vpack.c.bf16 %v172_v10, %v171_v9 }
  0xa5   :  { %704 = vmatprep.subr.bf16.mxu0 %v703_v11  ;;  %v194_v24 = vpop.permute.xlu0 %193 }
  0xa6   :  { %706 = vmatpush3.bf16.msra.mxu0 %v703_v11  ;;  %v199_v22 = vpop.permute.xlu1 %198 }
  0xa9   :  { %647 = vmatmul.mubr.msk.f32.vlgmr.msra.gmra.mrb[0].mxu0 %vm221_vm0, %v174_v12  ;;  %v204_v36 = vpop.permute.xlu0 %203 }
  0xaa   :  { %649 = vmatprep.mubr.msk.f32.mxu0 %vm221_vm0, %v175_v13  ;;  %v209_v33 = vpop.permute.xlu1 %208 }
  0xad   :  { %650 = vmatmul.mubr.msk.f32.gmra.mrb[2].mxu0 %vm221_vm0, %v176_v14  ;;  %v214_v48 = vpop.permute.xlu0 %213 }
  0xae   :  { %652 = vmatprep.mubr.msk.f32.mxu0 %vm221_vm0, %v177_v15  ;;  %v219_v45 = vpop.permute.xlu1 %218  ;;  %v484_v15 = vld [vmem:[%s977_s7] sm:$0x3] }
  0xb1   :  { %653 = vmatmul.mubr.msk.f32.gmra.mrb[4].mxu0 %vm221_vm0, %v178_v16  ;;  %v366_v62 = vpop.permute.xlu0 %365 }
  0xb2   :  { %655 = vmatprep.mubr.msk.f32.mxu0 %vm221_vm0, %v179_v17  ;;  %v371_v61 = vpop.permute.xlu1 %370 }
  0xb5   :  { %656 = vmatmul.mubr.msk.f32.gmra.mrb[6].mxu0 %vm221_vm0, %v180_v18  ;;  %v376_v7 = vpop.permute.xlu0 %375 }
  0xb6   :  { %v381_v4 = vpop.permute.xlu1 %380 }
  0xb9   :  { %v488_v16 = vpop.permute.xlu0 %487 }
 0x17c   :  { %v648_v23 = vpop.f32.mrb[0].mxu0 }
 0x17d   :  { %v318_v25 = vadd.f32 %v648_v23, %v189_v20  ;;  %v312_v26 = vpop.f32.mrb[1].mxu0 }
 0x17e   :  { %v313_v27 = vadd.f32 %v312_v26, %v184_v21 }
 0x17f   :  { %v352_v28 = vmax.f32 %v318_v25, 0.0 }
 0x180   :  { %v351_v29 = vmax.f32 %v313_v27, 0.0  ;;  %v651_v30 = vpop.f32.mrb[2].mxu0 }
 0x181   :  { %v328_v31 = vadd.f32 %v651_v30, %v199_v22  ;;  %v322_v32 = vpop.f32.mrb[3].mxu0 }
 0x182   :  { %v323_v34 = vadd.f32 %v322_v32, %v194_v24  ;;  %v707_v35 = vpack.c.bf16 %v352_v28, %v351_v29 }
 0x183   :  { %v354_v37 = vmax.f32 %v328_v31, 0.0 }
 0x184   :  { %v353_v38 = vmax.f32 %v323_v34, 0.0  ;;  %v654_v39 = vpop.f32.mrb[4].mxu0  ;;  %708 = vmatprep.subr.bf16.mxu1 %v707_v35 }
 0x185   :  { %v338_v40 = vadd.f32 %v654_v39, %v209_v33  ;;  %v332_v41 = vpop.f32.mrb[5].mxu0  ;;  %710 = vmatpush3.bf16.msra.mxu1 %v707_v35 }
 0x186   :  { %v711_v42 = vpack.c.bf16 %v354_v37, %v353_v38  ;;  %v333_v43 = vadd.f32 %v332_v41, %v204_v36 }
 0x187   :  { %v356_v44 = vmax.f32 %v338_v40, 0.0 }
 0x188   :  { %v355_v46 = vmax.f32 %v333_v43, 0.0  ;;  %v657_v47 = vpop.f32.mrb[6].mxu0  ;;  %712 = vmatprep.subr.bf16.mxu1 %v711_v42 }
 0x189   :  { %v348_v49 = vadd.f32 %v657_v47, %v219_v45  ;;  %v342_v50 = vpop.f32.mrb[7].mxu0  ;;  %714 = vmatpush3.bf16.msra.mxu1 %v711_v42 }
 0x18a   :  { %v715_v51 = vpack.c.bf16 %v356_v44, %v355_v46  ;;  %v343_v52 = vadd.f32 %v342_v50, %v214_v48 }
 0x18b   :  { %v358_v53 = vmax.f32 %v348_v49, 0.0 }
 0x18c   :  { %v357_v54 = vmax.f32 %v343_v52, 0.0  ;;  %716 = vmatprep.subr.bf16.mxu1 %v715_v51 }
 0x18d   :  { %718 = vmatpush3.bf16.msra.mxu1 %v715_v51 }
 0x18e   :  { %v719_v55 = vpack.c.bf16 %v358_v53, %v357_v54 }
 0x190   :  { %720 = vmatprep.subr.bf16.mxu1 %v719_v55 }
 0x191   :  { %722 = vmatpush3.bf16.msra.mxu1 %v719_v55 }
 0x192   :  { %723 = vmatprep.subr.bf16.mxu1 %v763_v59 }
 0x194   :  { %675 = vmatmul.mubr.msk.f32.vlgmr.msra.gmra.mrb[0].mxu1 %vm221_vm0, %v360_v56 }
 0x195   :  { %677 = vmatprep.mubr.msk.f32.mxu1 %vm221_vm0, %v361_v57 }
 0x198   :  { %678 = vmatmul.mubr.msk.f32.gmra.mrb[2].mxu1 %vm221_vm0, %v362_v58 }
 0x199   :  { %688 = vmatprep.mubr.msk.f32.mxu1 %vm764_vm1, %v765_v60 }
 0x267   :  { %v676_v63 = vpop.f32.mrb[0].mxu1 }
 0x268   :  { %v467_v0 = vadd.f32 %v676_v63, %v371_v61  ;;  %v461_v1 = vpop.f32.mrb[1].mxu1 }
 0x269   :  { %v462_v2 = vadd.f32 %v461_v1, %v366_v62 }
 0x26a   :  { %v481_v3 = vmax.f32 %v467_v0, 0.0 }
 0x26b   :  { %v480_v5 = vmax.f32 %v462_v2, 0.0  ;;  %v679_v6 = vpop.f32.mrb[2].mxu1 }
 0x26c   :  { %v477_v8 = vadd.f32 %v679_v6, %v381_v4  ;;  %v471_v9 = vpop.f32.mrb[3].mxu1 }
 0x26d   :  { %v724_v10 = vpack.c.bf16 %v481_v3, %v480_v5  ;;  %v472_v11 = vadd.f32 %v471_v9, %v376_v7 }
 0x26e   :  { %v483_v12 = vmax.f32 %v477_v8, 0.0 }
 0x26f   :  { %v482_v13 = vmax.f32 %v472_v11, 0.0  ;;  %725 = vmatpush3.bf16.msra.mxu1 %v724_v10 }
 0x270   :  { %726 = vmatprep.subr.bf16.mxu1 %v763_v59 }
 0x271   :  { %v727_v14 = vpack.c.bf16 %v483_v12, %v482_v13 }
 0x273   :  { %728 = vmatpush3.bf16.msra.mxu1 %v727_v14 }
 0x276   :  { %689 = vmatmul.mubr.msk.f32.vlgmr.msra.gmra.mrb[4].mxu1 %vm490_vm2, %v484_v15 }
 0x349   :  { %v560_v17 = vpop.f32.mrb[4].mxu1 }
 0x34a   :  { %v561_v18 = vadd.f32 %v560_v17, %v488_v16  ;;  %v690_v19 = vpop.f32.mrb[5].mxu1 }
 0x34c   :  { %564 = vst [vmem:[#allocation2] sm:$0x1] %v561_v18  ;;  %v565_v20 = vmul.f32 -0.5, %v561_v18 }
 0x34e   :  { %v566_v21 = vmul.f32 1.442695, %v565_v20 }
 0x350   :  { %736 = vpow2.f32 %v566_v21 }
 0x35a   :  { %v737_v22 = vpop.eup %736 }
 0x35b   :  { %568 = vst [vmem:[#allocation2] sm:$0x2] %v737_v22 }
 0x35c   :  { %749 = shalt.err (!%p746_p4)
}
 0x35d   :  { %s750_s24 = scalar_lea.hbm %s979_s9, 32 }
 0x35e   :  { %p751_p5 = scmp.ne.s32.totalorder %s979_s9, %s750_s24  ;;  %p754_p6 = scmp.lt.u32.totalorder %s750_s24, %s979_s9 }
 0x360   :  { %p756_p7 = pnand %p754_p6, %p751_p5 }
 0x362   :  { %759 = shalt.err (!%p756_p7)
}
 0x363   :  { %578 = dma.vmem_to_hbm [thread:$0]  %s576_s4, 32, %s979_s9, [#allocation3]  }
 0x364   :  { %760 = dma.done.wait [#allocation3], 32  }
 0x365   :  { %761 = vsyncadd [#allocation3], 4294967264 }
 0x366   :  { %582 = vsyncpa [#allocation3], 1 }

</bundles_post_ra>
